<compile_context>
chip_gen: v7x
topology: tpu7x:2x2x1
jax: 0.10.0
libtpu: 0.0.40
codegen_flags: <defaults>
</compile_context>

<pallas_src>
import math

import numpy as np
import jax
import jax.numpy as jnp
from jax.experimental import pallas as pl
from jax.experimental.pallas import tpu as pltpu

WINDOW_SIZE = 11
PAD = WINDOW_SIZE // 2
C1 = 0.01 ** 2
C2 = 0.03 ** 2


def _gaussian_weights(window_size=WINDOW_SIZE, sigma=1.5):
    g = np.array(
        [math.exp(-((x - window_size // 2) ** 2) / (2.0 * sigma ** 2))
         for x in range(window_size)],
        dtype=np.float64)
    return (g / g.sum()).astype(np.float32)


def _band_matrix(n, weights):
    """M[i, k] = w[k - i + PAD] on the band |k - i| <= PAD.

    Left-multiplying by M implements the zero-padded 'same' 1-D gaussian conv
    along the row axis (out-of-range taps simply absent == zero padding).
    """
    m = np.zeros((n, n), dtype=np.float32)
    for i in range(n):
        for d in range(-PAD, PAD + 1):
            k = i + d
            if 0 <= k < n:
                m[i, k] = weights[d + PAD]
    return m


def _pick_bc_tile(BC, W):
    # Smallest divisor of BC whose tile lane width (bc_tile * W) is a multiple
    # of 128 (lane-dense blocks); otherwise fall back to one full-width tile
    # (block == full array, which is always a legal BlockSpec).
    for d in range(1, BC + 1):
        if BC % d == 0 and (d * W) % 128 == 0:
            return d
    return BC


def _make_kernel():
    def kernel(ah_ref, bw_ref, x_ref, y_ref, msep_ref, ssimp_ref):
        ah = ah_ref[...]   # (H, H)    banded row-conv matrix
        bw = bw_ref[...]   # (TN, TN)  block-diagonal col-conv matrix
        x = x_ref[...]     # (H, TN)   tile of img1 slabs, TN = bc_tile * W
        y = y_ref[...]     # (H, TN)   tile of img2 slabs

        # ---- MSE partial (lane-dense elementwise + full reduce) ----------
        d = x - y
        sq_sum = jnp.sum(d * d)

        # ---- SSIM partial -------------------------------------------------
        def gconv(z):
            # separable 11x11 gaussian 'same' conv as two MXU matmuls
            t = jnp.dot(ah, z, preferred_element_type=jnp.float32)
            return jnp.dot(t, bw, preferred_element_type=jnp.float32)

        mu1 = gconv(x)
        mu2 = gconv(y)
        xx = gconv(x * x)
        yy = gconv(y * y)
        xy = gconv(x * y)

        mu1_sq = mu1 * mu1
        mu2_sq = mu2 * mu2
        mu1_mu2 = mu1 * mu2
        sigma1_sq = xx - mu1_sq
        sigma2_sq = yy - mu2_sq
        sigma12 = xy - mu1_mu2

        num = (2.0 * mu1_mu2 + C1) * (2.0 * sigma12 + C2)
        den = (mu1_sq + mu2_sq + C1) * (sigma1_sq + sigma2_sq + C2)
        # den >= C1*C2 > 0, so approx reciprocal (EUP slot) is safe.
        ssim_sum = jnp.sum(num * pl.reciprocal(den, approx=True))

        msep_ref[...] = jnp.reshape(sq_sum, (1, 1, 1))
        ssimp_ref[...] = jnp.reshape(ssim_sum, (1, 1, 1))

    return kernel


def combined_loss(out, tgt, alpha=0.5):
    """Returns (loss, mse, ssim) scalars, matching CombinedLoss.forward."""
    B, C, H, W = out.shape
    BC = B * C
    bc_tile = _pick_bc_tile(BC, W)
    G = BC // bc_tile
    TN = bc_tile * W

    weights = _gaussian_weights()
    ah = jnp.asarray(_band_matrix(H, weights))                 # (H, H)
    bw_w = _band_matrix(W, weights).T                          # (W, W), right-mult form
    bw = jnp.asarray(np.kron(np.eye(bc_tile, dtype=np.float32), bw_w))  # (TN, TN)

    # Lane-dense slabs: X2[h, b*W + w] = img[b, h, w]
    x2 = jnp.transpose(out.astype(jnp.float32).reshape(BC, H, W),
                       (1, 0, 2)).reshape(H, BC * W)
    y2 = jnp.transpose(tgt.astype(jnp.float32).reshape(BC, H, W),
                       (1, 0, 2)).reshape(H, BC * W)

    kernel = _make_kernel()

    msep, ssimp = pl.pallas_call(
        kernel,
        out_shape=(
            jax.ShapeDtypeStruct((G, 1, 1), jnp.float32),
            jax.ShapeDtypeStruct((G, 1, 1), jnp.float32),
        ),
        grid_spec=pltpu.PrefetchScalarGridSpec(
            num_scalar_prefetch=0,
            grid=(G,),
            in_specs=[
                pl.BlockSpec((H, H), lambda g: (0, 0)),     # ah (resident)
                pl.BlockSpec((TN, TN), lambda g: (0, 0)),   # bw (resident)
                pl.BlockSpec((H, TN), lambda g: (0, g)),    # img1 tile
                pl.BlockSpec((H, TN), lambda g: (0, g)),    # img2 tile
            ],
            out_specs=[
                pl.BlockSpec((1, 1, 1), lambda g: (g, 0, 0)),
                pl.BlockSpec((1, 1, 1), lambda g: (g, 0, 0)),
            ],
        ),
        compiler_params=pltpu.CompilerParams(
            dimension_semantics=("parallel",)),
    )(ah, bw, x2, y2)

    inv_n = 1.0 / float(BC * H * W)
    mse_val = jnp.sum(msep) * inv_n
    ssim_val = jnp.sum(ssimp) * inv_n
    loss = alpha * mse_val + (1.0 - alpha) * (1.0 - ssim_val)
    return loss, mse_val, ssim_val


def _reference_combined_loss(out, tgt, alpha=0.5):
    """Plain-JAX reference (same math, no Pallas) for a sanity check."""
    B, C, H, W = out.shape
    w = jnp.asarray(_gaussian_weights(), dtype=jnp.float32)
    win2d = jnp.outer(w, w)  # (11, 11)

    def conv_same(img):  # img: (B, C, H, W)
        p = jnp.pad(img, ((0, 0), (0, 0), (PAD, PAD), (PAD, PAD)))
        acc = jnp.zeros_like(img)
        for u in range(WINDOW_SIZE):
            for v in range(WINDOW_SIZE):
                acc = acc + win2d[u, v] * p[:, :, u:u + H, v:v + W]
        return acc

    x = out.astype(jnp.float32)
    y = tgt.astype(jnp.float32)
    mse = jnp.mean((x - y) ** 2)
    mu1, mu2 = conv_same(x), conv_same(y)
    s1 = conv_same(x * x) - mu1 ** 2
    s2 = conv_same(y * y) - mu2 ** 2
    s12 = conv_same(x * y) - mu1 * mu2
    num = (2 * mu1 * mu2 + C1) * (2 * s12 + C2)
    den = (mu1 ** 2 + mu2 ** 2 + C1) * (s1 + s2 + C2)
    ssim_v = jnp.mean(num / den)
    loss = alpha * mse + (1 - alpha) * (1 - ssim_v)
    return loss, mse, ssim_v


if __name__ == "__main__":
    key = jax.random.PRNGKey(0)
    k1, k2 = jax.random.split(key)
    B, C, H, W = 2, 4, 16, 16
    out = jax.random.uniform(k1, (B, C, H, W), dtype=jnp.float32)
    tgt = jax.random.uniform(k2, (B, C, H, W), dtype=jnp.float32)

    loss, mse_val, ssim_val = combined_loss(out, tgt, alpha=0.5)
    jax.block_until_ready((loss, mse_val, ssim_val))

    ref_loss, ref_mse, ref_ssim = _reference_combined_loss(out, tgt, alpha=0.5)
    # tolerance accounts for f32 summation-order differences + approx reciprocal
    assert abs(float(loss) - float(ref_loss)) < 1e-3
    assert abs(float(mse_val) - float(ref_mse)) < 1e-3
    assert abs(float(ssim_val) - float(ref_ssim)) < 1e-3

    print("KERNEL_OK")
</pallas_src>

<mosaic_0001>
module attributes {stable_mosaic.version = 11 : i64} {
  func.func @kernel(%arg0: i32, %arg1: memref<16x16xf32, #tpu.memory_space<vmem>>, %arg2: memref<128x128xf32, #tpu.memory_space<vmem>>, %arg3: memref<16x128xf32, #tpu.memory_space<vmem>>, %arg4: memref<16x128xf32, #tpu.memory_space<vmem>>, %arg5: memref<1x1x1xf32, #tpu.memory_space<vmem>>, %arg6: memref<1x1x1xf32, #tpu.memory_space<vmem>>) attributes {dimension_semantics = [#tpu.dimension_semantics<parallel>], iteration_bounds = array<i64: 1>, scalar_prefetch = 0 : i64, scratch_operands = 0 : i64, tpu.core_type = #tpu.core_type<tc>, window_params = [{pipeline_mode = #tpu.pipeline_mode<synchronous>, transform_indices = @transform_0, window_bounds = array<i64: 16, 16>}, {pipeline_mode = #tpu.pipeline_mode<synchronous>, transform_indices = @transform_1, window_bounds = array<i64: 128, 128>}, {transform_indices = @transform_2, window_bounds = array<i64: 16, 128>}, {transform_indices = @transform_3, window_bounds = array<i64: 16, 128>}, {transform_indices = @transform_4, window_bounds = array<i64: 1, 1, 1>}, {transform_indices = @transform_5, window_bounds = array<i64: 1, 1, 1>}]} {
    %c0 = arith.constant 0 : index
    %c0_0 = arith.constant 0 : index
    %0 = vector.load %arg1[%c0, %c0_0] : memref<16x16xf32, #tpu.memory_space<vmem>>, vector<16x16xf32>
    %c0_1 = arith.constant 0 : index
    %c0_2 = arith.constant 0 : index
    %1 = vector.load %arg2[%c0_1, %c0_2] : memref<128x128xf32, #tpu.memory_space<vmem>>, vector<128x128xf32>
    %c0_3 = arith.constant 0 : index
    %c0_4 = arith.constant 0 : index
    %2 = vector.load %arg3[%c0_3, %c0_4] : memref<16x128xf32, #tpu.memory_space<vmem>>, vector<16x128xf32>
    %c0_5 = arith.constant 0 : index
    %c0_6 = arith.constant 0 : index
    %3 = vector.load %arg4[%c0_5, %c0_6] : memref<16x128xf32, #tpu.memory_space<vmem>>, vector<16x128xf32>
    %4 = arith.subf %2, %3 : vector<16x128xf32>
    %5 = arith.mulf %4, %4 : vector<16x128xf32>
    %6 = vector.shape_cast %5 : vector<16x128xf32> to vector<1x16x128xf32>
    %cst = arith.constant dense<0.000000e+00> : vector<1xf32>
    %7 = vector.multi_reduction <add>, %6, %cst [1, 2] : vector<1x16x128xf32> to vector<1xf32>
    %8 = vector.shape_cast %7 : vector<1xf32> to vector<1x1x1xf32>
    %9 = vector.extract %8[0, 0, 0] : f32 from vector<1x1x1xf32>
    %cst_7 = arith.constant dense<0.000000e+00> : vector<16x128xf32>
    %10 = tpu.matmul %0, %2, %cst_7 {dimension_numbers = #tpu.dot_dimension_numbers<[1], [0], [0], [1], [0, 0, 1, 1], [], []>} : vector<16x16xf32>, vector<16x128xf32>, vector<16x128xf32> -> vector<16x128xf32>
    %cst_8 = arith.constant dense<0.000000e+00> : vector<16x128xf32>
    %11 = tpu.matmul %10, %1, %cst_8 {dimension_numbers = #tpu.dot_dimension_numbers<[1], [0], [0], [1], [0, 0, 1, 1], [], []>} : vector<16x128xf32>, vector<128x128xf32>, vector<16x128xf32> -> vector<16x128xf32>
    %cst_9 = arith.constant dense<0.000000e+00> : vector<16x128xf32>
    %12 = tpu.matmul %0, %3, %cst_9 {dimension_numbers = #tpu.dot_dimension_numbers<[1], [0], [0], [1], [0, 0, 1, 1], [], []>} : vector<16x16xf32>, vector<16x128xf32>, vector<16x128xf32> -> vector<16x128xf32>
    %cst_10 = arith.constant dense<0.000000e+00> : vector<16x128xf32>
    %13 = tpu.matmul %12, %1, %cst_10 {dimension_numbers = #tpu.dot_dimension_numbers<[1], [0], [0], [1], [0, 0, 1, 1], [], []>} : vector<16x128xf32>, vector<128x128xf32>, vector<16x128xf32> -> vector<16x128xf32>
    %14 = arith.mulf %2, %2 : vector<16x128xf32>
    %cst_11 = arith.constant dense<0.000000e+00> : vector<16x128xf32>
    %15 = tpu.matmul %0, %14, %cst_11 {dimension_numbers = #tpu.dot_dimension_numbers<[1], [0], [0], [1], [0, 0, 1, 1], [], []>} : vector<16x16xf32>, vector<16x128xf32>, vector<16x128xf32> -> vector<16x128xf32>
    %cst_12 = arith.constant dense<0.000000e+00> : vector<16x128xf32>
    %16 = tpu.matmul %15, %1, %cst_12 {dimension_numbers = #tpu.dot_dimension_numbers<[1], [0], [0], [1], [0, 0, 1, 1], [], []>} : vector<16x128xf32>, vector<128x128xf32>, vector<16x128xf32> -> vector<16x128xf32>
    %17 = arith.mulf %3, %3 : vector<16x128xf32>
    %cst_13 = arith.constant dense<0.000000e+00> : vector<16x128xf32>
    %18 = tpu.matmul %0, %17, %cst_13 {dimension_numbers = #tpu.dot_dimension_numbers<[1], [0], [0], [1], [0, 0, 1, 1], [], []>} : vector<16x16xf32>, vector<16x128xf32>, vector<16x128xf32> -> vector<16x128xf32>
    %cst_14 = arith.constant dense<0.000000e+00> : vector<16x128xf32>
    %19 = tpu.matmul %18, %1, %cst_14 {dimension_numbers = #tpu.dot_dimension_numbers<[1], [0], [0], [1], [0, 0, 1, 1], [], []>} : vector<16x128xf32>, vector<128x128xf32>, vector<16x128xf32> -> vector<16x128xf32>
    %20 = arith.mulf %2, %3 : vector<16x128xf32>
    %cst_15 = arith.constant dense<0.000000e+00> : vector<16x128xf32>
    %21 = tpu.matmul %0, %20, %cst_15 {dimension_numbers = #tpu.dot_dimension_numbers<[1], [0], [0], [1], [0, 0, 1, 1], [], []>} : vector<16x16xf32>, vector<16x128xf32>, vector<16x128xf32> -> vector<16x128xf32>
    %cst_16 = arith.constant dense<0.000000e+00> : vector<16x128xf32>
    %22 = tpu.matmul %21, %1, %cst_16 {dimension_numbers = #tpu.dot_dimension_numbers<[1], [0], [0], [1], [0, 0, 1, 1], [], []>} : vector<16x128xf32>, vector<128x128xf32>, vector<16x128xf32> -> vector<16x128xf32>
    %23 = arith.mulf %11, %11 : vector<16x128xf32>
    %24 = arith.mulf %13, %13 : vector<16x128xf32>
    %25 = arith.mulf %11, %13 : vector<16x128xf32>
    %26 = arith.subf %16, %23 : vector<16x128xf32>
    %27 = arith.subf %19, %24 : vector<16x128xf32>
    %28 = arith.subf %22, %25 : vector<16x128xf32>
    %cst_17 = arith.constant 2.000000e+00 : f32
    %29 = vector.broadcast %cst_17 : f32 to vector<16x128xf32>
    %30 = arith.mulf %29, %25 : vector<16x128xf32>
    %cst_18 = arith.constant 9.99999974E-5 : f32
    %31 = vector.broadcast %cst_18 : f32 to vector<16x128xf32>
    %32 = arith.addf %30, %31 : vector<16x128xf32>
    %cst_19 = arith.constant 2.000000e+00 : f32
    %33 = vector.broadcast %cst_19 : f32 to vector<16x128xf32>
    %34 = arith.mulf %33, %28 : vector<16x128xf32>
    %cst_20 = arith.constant 8.99999984E-4 : f32
    %35 = vector.broadcast %cst_20 : f32 to vector<16x128xf32>
    %36 = arith.addf %34, %35 : vector<16x128xf32>
    %37 = arith.mulf %32, %36 : vector<16x128xf32>
    %38 = arith.addf %23, %24 : vector<16x128xf32>
    %cst_21 = arith.constant 9.99999974E-5 : f32
    %39 = vector.broadcast %cst_21 : f32 to vector<16x128xf32>
    %40 = arith.addf %38, %39 : vector<16x128xf32>
    %41 = arith.addf %26, %27 : vector<16x128xf32>
    %cst_22 = arith.constant 8.99999984E-4 : f32
    %42 = vector.broadcast %cst_22 : f32 to vector<16x128xf32>
    %43 = arith.addf %41, %42 : vector<16x128xf32>
    %44 = arith.mulf %40, %43 : vector<16x128xf32>
    %45 = tpu.reciprocal %44 {approx = true} : vector<16x128xf32> -> vector<16x128xf32>
    %46 = arith.mulf %37, %45 : vector<16x128xf32>
    %47 = vector.shape_cast %46 : vector<16x128xf32> to vector<1x16x128xf32>
    %cst_23 = arith.constant dense<0.000000e+00> : vector<1xf32>
    %48 = vector.multi_reduction <add>, %47, %cst_23 [1, 2] : vector<1x16x128xf32> to vector<1xf32>
    %49 = vector.shape_cast %48 : vector<1xf32> to vector<1x1x1xf32>
    %50 = vector.extract %49[0, 0, 0] : f32 from vector<1x1x1xf32>
    %51 = vector.broadcast %9 : f32 to vector<1x1x1xf32>
    %c0_24 = arith.constant 0 : index
    %c0_25 = arith.constant 0 : index
    %c0_26 = arith.constant 0 : index
    %52 = vector.load %arg5[%c0_24, %c0_25, %c0_26] : memref<1x1x1xf32, #tpu.memory_space<vmem>>, vector<1x1x1xf32>
    tpu.vector_store %arg5[%c0_24, %c0_25, %c0_26], %51 {strides = array<i32>} : memref<1x1x1xf32, #tpu.memory_space<vmem>>, vector<1x1x1xf32>,
    %53 = vector.broadcast %50 : f32 to vector<1x1x1xf32>
    %c0_27 = arith.constant 0 : index
    %c0_28 = arith.constant 0 : index
    %c0_29 = arith.constant 0 : index
    %54 = vector.load %arg6[%c0_27, %c0_28, %c0_29] : memref<1x1x1xf32, #tpu.memory_space<vmem>>, vector<1x1x1xf32>
    tpu.vector_store %arg6[%c0_27, %c0_28, %c0_29], %53 {strides = array<i32>} : memref<1x1x1xf32, #tpu.memory_space<vmem>>, vector<1x1x1xf32>,
    return
  }
  func.func @transform_0(%arg0: i32) -> (i32, i32) {
    %c0_i32 = arith.constant 0 : i32
    %c0_i32_0 = arith.constant 0 : i32
    %c0_i32_1 = arith.constant 0 : i32
    return %c0_i32, %c0_i32_0 : i32, i32
  }
  func.func @transform_1(%arg0: i32) -> (i32, i32) {
    %c0_i32 = arith.constant 0 : i32
    %c0_i32_0 = arith.constant 0 : i32
    %c0_i32_1 = arith.constant 0 : i32
    return %c0_i32, %c0_i32_0 : i32, i32
  }
  func.func @transform_2(%arg0: i32) -> (i32, i32) {
    %c0_i32 = arith.constant 0 : i32
    %c0_i32_0 = arith.constant 0 : i32
    return %c0_i32, %arg0 : i32, i32
  }
  func.func @transform_3(%arg0: i32) -> (i32, i32) {
    %c0_i32 = arith.constant 0 : i32
    %c0_i32_0 = arith.constant 0 : i32
    return %c0_i32, %arg0 : i32, i32
  }
  func.func @transform_4(%arg0: i32) -> (i32, i32, i32) {
    %c0_i32 = arith.constant 0 : i32
    %c0_i32_0 = arith.constant 0 : i32
    %c0_i32_1 = arith.constant 0 : i32
    return %arg0, %c0_i32, %c0_i32_0 : i32, i32, i32
  }
  func.func @transform_5(%arg0: i32) -> (i32, i32, i32) {
    %c0_i32 = arith.constant 0 : i32
    %c0_i32_0 = arith.constant 0 : i32
    %c0_i32_1 = arith.constant 0 : i32
    return %arg0, %c0_i32, %c0_i32_0 : i32, i32, i32
  }
}

</mosaic_0001>

<bundles_post_ra>
// kernel: tpu_custom_call.1
= control target key start
LH: loop header
LB: loop body
LE: loop exit
PB: predicated region body
PF: predicated region fallthrough
CT: control target
= control target key end

     0   :  { %11 = vsyncpa [#allocation3], 0  ;;  %s1919_s0 = inlined_call_operand.hbm [shape: f32[16,16], index: 0, kind: input, shape index: {}]   ;;  %s1920_s1 = inlined_call_operand.hbm [shape: f32[128,128], index: 1, kind: input, shape index: {}]   ;;  %s1921_s2 = inlined_call_operand.hbm [shape: f32[16,128], index: 2, kind: input, shape index: {}]   ;;  %s1922_s3 = inlined_call_operand.hbm [shape: f32[16,128], index: 3, kind: input, shape index: {}]   ;;  %s1923_s4 = inlined_call_operand.hbm [shape: f32[1,1,1], index: 4, kind: output, shape index: {0}]   ;;  %s1924_s5 = inlined_call_operand.hbm [shape: f32[1,1,1], index: 5, kind: output, shape index: {1}]  }
   0x1   :  { %12 = vsyncpa [#allocation6], 0 }
   0x2   :  { %13 = vsyncpa [#allocation9], 0 }
   0x3   :  { %14 = vsyncpa [#allocation4], 0 }
   0x4   :  { %15 = vsyncpa [#allocation12], 0  ;;  %s1625_s18 = smov [#allocation5]   ;;  %s1626_s20 = smov [#allocation2]  }
   0x5   :  { %s33_s19 = sshll.u32 %s1625_s18, 4  ;;  %s21_s21 = sshll.u32 %s1626_s20, 4  ;;  %s34_s19 = int_to_ptr.vmem [resolvable:$true] %s33_s19  ;;  %s1663_s21 = int_to_ptr.vmem [resolvable:$true] %s21_s21 }
   0x6   :  { %s1483_s24 = scalar_lea.hbm %s1920_s1, 2048 }
   0x7   :  { %p1484_p0 = scmp.ne.s32.totalorder %s1920_s1, %s1483_s24  ;;  %p1487_p1 = scmp.lt.u32.totalorder %s1483_s24, %s1920_s1 }
   0x9   :  { %p1489_p2 = pnand %p1487_p1, %p1484_p0 }
   0xb   :  { %1492 = shalt.err (!%p1489_p2)
}
   0xc   :  { %s1493_s29 = scalar_lea.vmem %s34_s19, 2048  ;;  %p1498_p4 = scmp.lt.s32.totalorder %s34_s19, %s34_s19 }
   0xd   :  { %p1494_p3 = scmp.ne.s32.totalorder %s34_s19, %s1493_s29  ;;  %p1499_p5 = scmp.lt.s32.totalorder %s1493_s29, %s1493_s29 }
   0xf   :  { %p1500_p6 = por %p1499_p5, %p1498_p4 }
  0x11   :  { %p1501_p7 = pnand %p1500_p6, %p1494_p3 }
  0x13   :  { %1504 = shalt.err (!%p1501_p7)
}
  0x14   :  { %s1627_s30 = smov 128   ;;  %s1628_s6 = smov 8  }
  0x15   :  { %39 = dma.hbm_to_vmem [thread:$0]  %s1920_s1, 2048, %s34_s19, [#allocation6], %s1627_s30, %s1627_s30, %s1628_s6  }
  0x16   :  { %s1505_s11 = scalar_lea.hbm %s1919_s0, 256 }
  0x17   :  { %p1506_p8 = scmp.ne.s32.totalorder %s1919_s0, %s1505_s11  ;;  %p1509_p9 = scmp.lt.u32.totalorder %s1505_s11, %s1919_s0 }
  0x19   :  { %p1511_p10 = pnand %p1509_p9, %p1506_p8 }
  0x1b   :  { %1514 = shalt.err (!%p1511_p10)
}
  0x1c   :  { %s1515_s16 = scalar_lea.vmem %s1663_s21, 256  ;;  %p1520_p12 = scmp.lt.s32.totalorder %s1663_s21, %s1663_s21 }
  0x1d   :  { %p1516_p11 = scmp.ne.s32.totalorder %s1663_s21, %s1515_s16  ;;  %p1521_p13 = scmp.lt.s32.totalorder %s1515_s16, %s1515_s16 }
  0x1f   :  { %p1522_p0 = por %p1521_p13, %p1520_p12 }
  0x21   :  { %p1523_p1 = pnand %p1522_p0, %p1516_p11 }
  0x23   :  { %1526 = shalt.err (!%p1523_p1)
}
  0x24   :  { %27 = dma.hbm_to_vmem [thread:$0]  %s1919_s0, 256, %s1663_s21, [#allocation3], %s1627_s30, %s1627_s30, %s1628_s6  }
  0x25   :  { %s1629_s18 = smov [#allocation7]   ;;  %s1630_s20 = smov [#allocation8]  }
  0x26   :  { %s45_s19 = sshll.u32 %s1629_s18, 4  ;;  %s57_s22 = sshll.u32 %s1630_s20, 4  ;;  %s46_s19 = int_to_ptr.vmem [resolvable:$true] %s45_s19  ;;  %s1700_s22 = int_to_ptr.vmem [resolvable:$true] %s57_s22 }
  0x27   :  { %s1527_s25 = scalar_lea.hbm %s1921_s2, 256 }
  0x28   :  { %p1528_p2 = scmp.ne.s32.totalorder %s1921_s2, %s1527_s25  ;;  %p1531_p3 = scmp.lt.u32.totalorder %s1527_s25, %s1921_s2 }
  0x2a   :  { %p1533_p4 = pnand %p1531_p3, %p1528_p2 }
  0x2c   :  { %1536 = shalt.err (!%p1533_p4)
}
  0x2d   :  { %s1537_s0 = scalar_lea.vmem %s46_s19, 256  ;;  %p1542_p6 = scmp.lt.s32.totalorder %s46_s19, %s46_s19 }
  0x2e   :  { %p1538_p5 = scmp.ne.s32.totalorder %s46_s19, %s1537_s0  ;;  %p1543_p7 = scmp.lt.s32.totalorder %s1537_s0, %s1537_s0 }
  0x30   :  { %p1544_p8 = por %p1543_p7, %p1542_p6 }
  0x32   :  { %p1545_p9 = pnand %p1544_p8, %p1538_p5 }
  0x34   :  { %1548 = shalt.err (!%p1545_p9)
}
  0x35   :  { %51 = dma.hbm_to_vmem [thread:$0]  %s1921_s2, 256, %s46_s19, [#allocation6], %s1627_s30, %s1627_s30, %s1628_s6  }
  0x36   :  { %s1549_s10 = scalar_lea.hbm %s1922_s3, 256 }
  0x37   :  { %p1550_p10 = scmp.ne.s32.totalorder %s1922_s3, %s1549_s10  ;;  %p1553_p11 = scmp.lt.u32.totalorder %s1549_s10, %s1922_s3 }
  0x39   :  { %p1555_p12 = pnand %p1553_p11, %p1550_p10 }
  0x3b   :  { %1558 = shalt.err (!%p1555_p12)
}
  0x3c   :  { %s1559_s15 = scalar_lea.vmem %s1700_s22, 256  ;;  %p1564_p0 = scmp.lt.s32.totalorder %s1700_s22, %s1700_s22 }
  0x3d   :  { %p1560_p13 = scmp.ne.s32.totalorder %s1700_s22, %s1559_s15  ;;  %p1565_p1 = scmp.lt.s32.totalorder %s1559_s15, %s1559_s15 }
  0x3f   :  { %p1566_p2 = por %p1565_p1, %p1564_p0 }
  0x41   :  { %p1567_p3 = pnand %p1566_p2, %p1560_p13 }
  0x43   :  { %1570 = shalt.err (!%p1567_p3)
}
  0x44   :  { %63 = dma.hbm_to_vmem [thread:$0]  %s1922_s3, 256, %s1700_s22, [#allocation9], %s1627_s30, %s1627_s30, %s1628_s6  }
  0x45   :  { %1615 = dma.done.wait [#allocation3], 256  }
  0x46   :  { %1616 = vsyncadd [#allocation3], 4294967040 }
  0x47   :  { %1617 = dma.done.wait [#allocation6], 2304  }
  0x48   :  { %1618 = vsyncadd [#allocation6], 4294964992 }
  0x49   :  { %1619 = dma.done.wait [#allocation9], 256  }
  0x4a   :  { %1620 = vsyncadd [#allocation9], 4294967040  ;;  %vm112_vm0 = vcmask 130048   ;;  %v1737_v0 = vld [vmem:[#allocation7] sm:$0xff]  ;;  %v1739_v1 = vld [vmem:[#allocation7 + $0x8] sm:$0xff]  ;;  %vm922_vm1 = vcmask 0  }
  0x4b   :  { %v1741_v2 = vld [vmem:[#allocation2] sm:$0xff]  ;;  %v1287_v3 = vpack.c.bf16 %v1739_v1, %v1737_v0  ;;  %v1749_v5 = vld [vmem:[#allocation8 + $0x8] sm:$0xff]  ;;  %v78_v7 = vld [vmem:[#allocation5] sm:$0xff]  ;;  %v419_v32 = vmul.f32 %v1737_v0, %v1737_v0  ;;  %v420_v33 = vmul.f32 %v1739_v1, %v1739_v1  ;;  %s1631_s30 = smov [#allocation10]  }
  0x4c   :  { %1081 = vmatprep.mubr.msk.f32.mxu0 %vm112_vm0, %v1741_v2  ;;  %v1747_v4 = vld [vmem:[#allocation8] sm:$0xff]  ;;  %v79_v8 = vld [vmem:[#allocation5 + $0x8] sm:$0xff]  ;;  %v81_v11 = vld [vmem:[#allocation5 + $0x18] sm:$0xff]  ;;  %v572_v38 = vmul.f32 %v1749_v5, %v1749_v5  ;;  %v724_v43 = vmul.f32 %v1749_v5, %v1739_v1  ;;  %s932_s6 = sshll.u32 %s1631_s30, 4  ;;  %s933_s6 = int_to_ptr.vmem [resolvable:$true] %s932_s6 }
  0x4d   :  { %v1323_v6 = vpack.c.bf16 %v1749_v5, %v1747_v4  ;;  %v80_v9 = vld [vmem:[#allocation5 + $0x10] sm:$0xff]  ;;  %1288 = vmatprep.subr.bf16.mxu0 %v1287_v3  ;;  %v1753_v10 = vpack.c.bf16 %v79_v8, %v78_v7  ;;  %v1755_v12 = vld [vmem:[#allocation2 + $0x8] sm:$0xff]  ;;  %v82_v14 = vld [vmem:[#allocation5 + $0x20] sm:$0xff]  ;;  %v1359_v34 = vpack.c.bf16 %v420_v33, %v419_v32  ;;  %v571_v37 = vmul.f32 %v1747_v4, %v1747_v4  ;;  %s1571_s1 = scalar_lea.vmem %s933_s6, 16  ;;  %s1575_s17 = scalar_lea.vmem %s933_s6, 32 }
  0x4e   :  { %1290 = vmatpush3.bf16.msra.mxu0 %v1287_v3  ;;  %v1757_v13 = vpack.c.bf16 %v81_v11, %v80_v9  ;;  %v83_v15 = vld [vmem:[#allocation5 + $0x28] sm:$0xff]  ;;  %v84_v17 = vld [vmem:[#allocation5 + $0x30] sm:$0xff]  ;;  %v85_v18 = vld [vmem:[#allocation5 + $0x38] sm:$0xff]  ;;  %v723_v42 = vmul.f32 %v1747_v4, %v1737_v0  ;;  %p1572_p4 = scmp.ne.s32.totalorder %s933_s6, %s1571_s1  ;;  %p1576_p5 = scmp.lt.s32.totalorder %s933_s6, %s933_s6 }
  0x4f   :  { %1324 = vmatprep.subr.bf16.mxu0 %v1323_v6  ;;  %1292 = vmatprep.subr.bf16.mxu1 %v1753_v10  ;;  %v1764_v16 = vpack.c.bf16 %v83_v15, %v82_v14  ;;  %v1773_v19 = vpack.c.bf16 %v85_v18, %v84_v17  ;;  %v86_v20 = vld [vmem:[#allocation5 + $0x40] sm:$0xff]  ;;  %v87_v21 = vld [vmem:[#allocation5 + $0x48] sm:$0xff]  ;;  %v88_v23 = vld [vmem:[#allocation5 + $0x50] sm:$0xff]  ;;  %v1395_v41 = vpack.c.bf16 %v572_v38, %v571_v37  ;;  %p1577_p6 = scmp.lt.s32.totalorder %s1575_s17, %s1571_s1 }
  0x50   :  { %1294 = vmatpush3.bf16.msra.mxu1 %v1753_v10  ;;  %v1779_v22 = vpack.c.bf16 %v87_v21, %v86_v20  ;;  %v89_v24 = vld [vmem:[#allocation5 + $0x58] sm:$0xff]  ;;  %v90_v26 = vld [vmem:[#allocation5 + $0x60] sm:$0xff]  ;;  %v91_v27 = vld [vmem:[#allocation5 + $0x68] sm:$0xff]  ;;  %v1431_v44 = vpack.c.bf16 %v724_v43, %v723_v42  ;;  %v99_v20 = vsub.f32 %v1739_v1, %v1749_v5 }
  0x51   :  { %1082 = vmatmul.mubr.msk.f32.vlgmr.msra.gmra.mrb[0].mxu0 %vm112_vm0, %v1755_v12  ;;  %1296 = vmatprep.subr.bf16.mxu1 %v1757_v13  ;;  %v1785_v25 = vpack.c.bf16 %v89_v24, %v88_v23  ;;  %v1791_v28 = vpack.c.bf16 %v91_v27, %v90_v26  ;;  %v92_v29 = vld [vmem:[#allocation5 + $0x70] sm:$0xff]  ;;  %v93_v30 = vld [vmem:[#allocation5 + $0x78] sm:$0xff]  ;;  %p1578_p7 = por %p1577_p6, %p1576_p5 }
  0x52   :  { %1326 = vmatpush3.bf16.msra.mxu0 %v1323_v6  ;;  %1123 = vmatprep.mubr.msk.f32.mxu0 %vm112_vm0, %v1741_v2  ;;  %v1797_v31 = vpack.c.bf16 %v93_v30, %v92_v29 }
  0x53   :  { %1328 = vmatprep.subr.bf16.mxu0 %v1753_v10  ;;  %p1579_p8 = pnand %p1578_p7, %p1572_p4 }
  0x54   :  { %1298 = vmatpush3.bf16.msra.mxu1 %v1757_v13 }
  0x55   :  { %1124 = vmatmul.mubr.msk.f32.vlgmr.msra.gmra.mrb[2].mxu0 %vm112_vm0, %v1755_v12  ;;  %1300 = vmatprep.subr.bf16.mxu1 %v1764_v16 }
  0x56   :  { %1330 = vmatpush3.bf16.msra.mxu0 %v1753_v10 }
  0x57   :  { %1332 = vmatprep.subr.bf16.mxu0 %v1757_v13 }
  0x58   :  { %1302 = vmatpush3.bf16.msra.mxu1 %v1764_v16 }
  0x59   :  { %1304 = vmatprep.subr.bf16.mxu1 %v1773_v19 }
  0x5a   :  { %1334 = vmatpush3.bf16.msra.mxu0 %v1757_v13 }
  0x5b   :  { %1336 = vmatprep.subr.bf16.mxu0 %v1764_v16 }
  0x5c   :  { %1306 = vmatpush3.bf16.msra.mxu1 %v1773_v19 }
  0x5d   :  { %1308 = vmatprep.subr.bf16.mxu1 %v1779_v22 }
  0x5e   :  { %1338 = vmatpush3.bf16.msra.mxu0 %v1764_v16 }
  0x5f   :  { %1340 = vmatprep.subr.bf16.mxu0 %v1773_v19 }
  0x60   :  { %1310 = vmatpush3.bf16.msra.mxu1 %v1779_v22 }
  0x61   :  { %1312 = vmatprep.subr.bf16.mxu1 %v1785_v25 }
  0x62   :  { %1342 = vmatpush3.bf16.msra.mxu0 %v1773_v19 }
  0x63   :  { %1344 = vmatprep.subr.bf16.mxu0 %v1779_v22 }
  0x64   :  { %1314 = vmatpush3.bf16.msra.mxu1 %v1785_v25 }
  0x65   :  { %1316 = vmatprep.subr.bf16.mxu1 %v1791_v28 }
  0x66   :  { %1346 = vmatpush3.bf16.msra.mxu0 %v1779_v22 }
  0x67   :  { %1348 = vmatprep.subr.bf16.mxu0 %v1785_v25 }
  0x68   :  { %1318 = vmatpush3.bf16.msra.mxu1 %v1791_v28 }
  0x69   :  { %1320 = vmatprep.subr.bf16.mxu1 %v1797_v31 }
  0x6a   :  { %1350 = vmatpush3.bf16.msra.mxu0 %v1785_v25 }
  0x6b   :  { %1352 = vmatprep.subr.bf16.mxu0 %v1791_v28 }
  0x6c   :  { %1322 = vmatpush3.bf16.msra.mxu1 %v1797_v31 }
  0x6d   :  { %1364 = vmatprep.subr.bf16.mxu1 %v1753_v10 }
  0x6e   :  { %1354 = vmatpush3.bf16.msra.mxu0 %v1791_v28 }
  0x6f   :  { %1356 = vmatprep.subr.bf16.mxu0 %v1797_v31 }
  0x72   :  { %1358 = vmatpush3.bf16.msra.mxu0 %v1797_v31 }
  0x73   :  { %1360 = vmatprep.subr.bf16.mxu0 %v1359_v34 }
 0x124   :  { %v1083_v35 = vpop.f32.mrb[0].mxu0 }
 0x125   :  { %v185_v36 = vpop.f32.mrb[1].mxu0 }
 0x126   :  { %1116 = vmatprep.mubr.f32.mxu1 %v185_v36 }
 0x127   :  { %1117 = vmatmul.mubr.f32.vlgmr.msra.gmra.mrb[0].mxu1 %v1083_v35 }
 0x128   :  { %v1125_v39 = vpop.f32.mrb[2].mxu0  ;;  %1366 = vmatpush3.bf16.msra.mxu1 %v1753_v10 }
 0x129   :  { %v335_v40 = vpop.f32.mrb[3].mxu0  ;;  %1368 = vmatprep.subr.bf16.mxu1 %v1757_v13 }
 0x12a   :  { %1158 = vmatprep.mubr.f32.mxu0 %v335_v40 }
 0x12b   :  { %1159 = vmatmul.mubr.f32.vlgmr.msra.gmra.mrb[4].mxu0 %v1125_v39 }
 0x12c   :  { %1362 = vmatpush3.bf16.msra.mxu0 %v1359_v34  ;;  %1165 = vmatprep.mubr.msk.f32.mxu0 %vm112_vm0, %v1741_v2 }
 0x12d   :  { %1396 = vmatprep.subr.bf16.mxu0 %v1395_v41  ;;  %1370 = vmatpush3.bf16.msra.mxu1 %v1757_v13 }
 0x12e   :  { %1372 = vmatprep.subr.bf16.mxu1 %v1764_v16 }
 0x12f   :  { %1166 = vmatmul.mubr.msk.f32.vlgmr.msra.gmra.mrb[6].mxu0 %vm112_vm0, %v1755_v12 }
 0x130   :  { %1398 = vmatpush3.bf16.msra.mxu0 %v1395_v41  ;;  %1207 = vmatprep.mubr.msk.f32.mxu0 %vm112_vm0, %v1741_v2 }
 0x131   :  { %1400 = vmatprep.subr.bf16.mxu0 %v1753_v10  ;;  %1374 = vmatpush3.bf16.msra.mxu1 %v1764_v16 }
 0x132   :  { %1376 = vmatprep.subr.bf16.mxu1 %v1773_v19 }
 0x133   :  { %1208 = vmatmul.mubr.msk.f32.vlgmr.msra.gmra.mrb[8].mxu0 %vm112_vm0, %v1755_v12 }
 0x134   :  { %1402 = vmatpush3.bf16.msra.mxu0 %v1753_v10 }
 0x135   :  { %1404 = vmatprep.subr.bf16.mxu0 %v1757_v13  ;;  %1378 = vmatpush3.bf16.msra.mxu1 %v1773_v19 }
 0x136   :  { %1380 = vmatprep.subr.bf16.mxu1 %v1779_v22 }
 0x138   :  { %1406 = vmatpush3.bf16.msra.mxu0 %v1757_v13 }
 0x139   :  { %1408 = vmatprep.subr.bf16.mxu0 %v1764_v16  ;;  %1382 = vmatpush3.bf16.msra.mxu1 %v1779_v22 }
 0x13a   :  { %1384 = vmatprep.subr.bf16.mxu1 %v1785_v25 }
 0x13c   :  { %1410 = vmatpush3.bf16.msra.mxu0 %v1764_v16 }
 0x13d   :  { %1412 = vmatprep.subr.bf16.mxu0 %v1773_v19  ;;  %1386 = vmatpush3.bf16.msra.mxu1 %v1785_v25 }
 0x13e   :  { %1388 = vmatprep.subr.bf16.mxu1 %v1791_v28 }
 0x140   :  { %1414 = vmatpush3.bf16.msra.mxu0 %v1773_v19 }
 0x141   :  { %1416 = vmatprep.subr.bf16.mxu0 %v1779_v22  ;;  %1390 = vmatpush3.bf16.msra.mxu1 %v1791_v28 }
 0x142   :  { %1392 = vmatprep.subr.bf16.mxu1 %v1797_v31 }
 0x144   :  { %1418 = vmatpush3.bf16.msra.mxu0 %v1779_v22 }
 0x145   :  { %1420 = vmatprep.subr.bf16.mxu0 %v1785_v25  ;;  %1394 = vmatpush3.bf16.msra.mxu1 %v1797_v31 }
 0x146   :  { %1436 = vmatprep.subr.bf16.mxu1 %v1753_v10 }
 0x148   :  { %1422 = vmatpush3.bf16.msra.mxu0 %v1785_v25 }
 0x149   :  { %1424 = vmatprep.subr.bf16.mxu0 %v1791_v28 }
 0x14c   :  { %1426 = vmatpush3.bf16.msra.mxu0 %v1791_v28 }
 0x14d   :  { %1428 = vmatprep.subr.bf16.mxu0 %v1797_v31 }
 0x150   :  { %1430 = vmatpush3.bf16.msra.mxu0 %v1797_v31 }
 0x151   :  { %1432 = vmatprep.subr.bf16.mxu0 %v1431_v44 }
 0x1fa   :  { %v1118_v45 = vpop.f32.mrb[0].mxu1 }
 0x1fb   :  { %v260_v46 = vpop.f32.mrb[1].mxu1  ;;  %v876_v48 = vmul.f32 %v1118_v45, %v1118_v45 }
 0x1fc   :  { %v875_v52 = vmul.f32 %v260_v46, %v260_v46 }
 0x1fe   :  { %v1160_v47 = vpop.f32.mrb[4].mxu0 }
 0x1ff   :  { %v878_v49 = vmul.f32 %v1160_v47, %v1160_v47  ;;  %v1862_v50 = vmul.f32 %v1160_v47, %v1118_v45  ;;  %v410_v51 = vpop.f32.mrb[5].mxu0 }
 0x200   :  { %v877_v53 = vmul.f32 %v410_v51, %v410_v51  ;;  %v1864_v54 = vmul.f32 %v410_v51, %v260_v46 }
 0x201   :  { %v898_v55 = vadd.f32 %v878_v49, %v876_v48 }
 0x202   :  { %v897_v56 = vadd.f32 %v877_v53, %v875_v52  ;;  %v1167_v57 = vpop.f32.mrb[6].mxu0 }
 0x203   :  { %v487_v58 = vpop.f32.mrb[7].mxu0 }
 0x204   :  { %1200 = vmatprep.mubr.f32.mxu1 %v487_v58  ;;  %v899_v15 = vadd.f32 0.0001, %v897_v56 }
 0x205   :  { %1201 = vmatmul.mubr.f32.vlgmr.msra.gmra.mrb[2].mxu1 %v1167_v57 }
 0x206   :  { %v1209_v59 = vpop.f32.mrb[8].mxu0  ;;  %1438 = vmatpush3.bf16.msra.mxu1 %v1753_v10 }
 0x207   :  { %v639_v60 = vpop.f32.mrb[9].mxu0  ;;  %1440 = vmatprep.subr.bf16.mxu1 %v1757_v13 }
 0x208   :  { %1242 = vmatprep.mubr.f32.mxu0 %v639_v60 }
 0x209   :  { %1243 = vmatmul.mubr.f32.vlgmr.msra.gmra.mrb[10].mxu0 %v1209_v59 }
 0x20a   :  { %1434 = vmatpush3.bf16.msra.mxu0 %v1431_v44  ;;  %1249 = vmatprep.mubr.msk.f32.mxu0 %vm112_vm0, %v1741_v2 }
 0x20b   :  { %1442 = vmatpush3.bf16.msra.mxu1 %v1757_v13 }
 0x20c   :  { %1444 = vmatprep.subr.bf16.mxu1 %v1764_v16 }
 0x20d   :  { %1250 = vmatmul.mubr.msk.f32.vlgmr.msra.gmra.mrb[12].mxu0 %vm112_vm0, %v1755_v12  ;;  %v900_v12 = vadd.f32 0.0001, %v898_v55 }
 0x20f   :  { %1446 = vmatpush3.bf16.msra.mxu1 %v1764_v16 }
 0x210   :  { %1448 = vmatprep.subr.bf16.mxu1 %v1773_v19 }
 0x213   :  { %1450 = vmatpush3.bf16.msra.mxu1 %v1773_v19  ;;  %v98_v19 = vsub.f32 %v1737_v0, %v1747_v4 }
 0x214   :  { %1452 = vmatprep.subr.bf16.mxu1 %v1779_v22 }
 0x215   :  { %v100_v21 = vmul.f32 %v98_v19, %v98_v19 }
 0x217   :  { %1454 = vmatpush3.bf16.msra.mxu1 %v1779_v22  ;;  %v101_v22 = vmul.f32 %v99_v20, %v99_v20 }
 0x218   :  { %1456 = vmatprep.subr.bf16.mxu1 %v1785_v25 }
 0x219   :  { %v102_v23 = vadd.f32 %v101_v22, %v100_v21 }
 0x21b   :  { %1458 = vmatpush3.bf16.msra.mxu1 %v1785_v25  ;;  %103 = vadd.xlane.f32.xlu0 %v102_v23  ;;  %v888_v25 = vmul.f32 2.0, %v1862_v50 }
 0x21c   :  { %1460 = vmatprep.subr.bf16.mxu1 %v1791_v28 }
 0x21d   :  { %v890_v30 = vadd.f32 0.0001, %v888_v25 }
 0x21f   :  { %1462 = vmatpush3.bf16.msra.mxu1 %v1791_v28  ;;  %v887_v28 = vmul.f32 2.0, %v1864_v54 }
 0x220   :  { %1464 = vmatprep.subr.bf16.mxu1 %v1797_v31 }
 0x221   :  { %v889_v5 = vadd.f32 0.0001, %v887_v28 }
 0x223   :  { %1466 = vmatpush3.bf16.msra.mxu1 %v1797_v31 }
 0x2a8   :  { %v104_v39 = vpop.xlane.xlu0 %103 }
 0x2a9   :  { %v105_v40 = vrot.slane %v104_v39, 4 }
 0x2ab   :  { %v106_v41 = vadd.f32 %v105_v40, %v104_v39 }
 0x2ad   :  { %v107_v42 = vrot.slane %v106_v41, 2 }
 0x2af   :  { %v108_v43 = vadd.f32 %v107_v42, %v106_v41 }
 0x2b1   :  { %v109_v44 = vrot.slane %v108_v43, 1 }
 0x2b3   :  { %v110_v45 = vadd.f32 %v109_v44, %v108_v43 }
 0x2b5   :  { %1467 = vpush %v110_v45 }
 0x2d8   :  { %v1202_v61 = vpop.f32.mrb[2].mxu1 }
 0x2d9   :  { %v882_v62 = vsub.f32 %v1202_v61, %v876_v48  ;;  %v562_v63 = vpop.f32.mrb[3].mxu1 }
 0x2da   :  { %v881_v2 = vsub.f32 %v562_v63, %v875_v52 }
 0x2dc   :  { %v1244_v3 = vpop.f32.mrb[10].mxu0 }
 0x2dd   :  { %v884_v6 = vsub.f32 %v1244_v3, %v878_v49  ;;  %v714_v7 = vpop.f32.mrb[11].mxu0 }
 0x2de   :  { %v883_v8 = vsub.f32 %v714_v7, %v877_v53 }
 0x2df   :  { %v902_v9 = vadd.f32 %v884_v6, %v882_v62 }
 0x2e0   :  { %v901_v10 = vadd.f32 %v883_v8, %v881_v2  ;;  %v1251_v11 = vpop.f32.mrb[12].mxu0 }
 0x2e1   :  { %v904_v13 = vadd.f32 0.0009, %v902_v9  ;;  %v791_v14 = vpop.f32.mrb[13].mxu0 }
 0x2e2   :  { %v903_v16 = vadd.f32 0.0009, %v901_v10  ;;  %1284 = vmatprep.mubr.f32.mxu1 %v791_v14 }
 0x2e3   :  { %v906_v17 = vmul.f32 %v904_v13, %v900_v12  ;;  %1285 = vmatmul.mubr.f32.vlgmr.msra.gmra.mrb[4].mxu1 %v1251_v11 }
 0x2e4   :  { %v905_v18 = vmul.f32 %v903_v16, %v899_v15 }
 0x2e5   :  { %1479 = vrcp.f32 %v906_v17 }
 0x2e6   :  { %1481 = vrcp.f32 %v905_v18  ;;  %s1468_s3 = spop %1467 }
 0x2e7   :  { %v921_v46 = vstv %s1468_s3 }
 0x2e8   :  { %923 = vst.msk [vmem:[#allocation10] sm:$0x1] %vm922_vm1, %v921_v46 }
 0x2ef   :  { %v1480_v33 = vpop.eup %1479 }
 0x2f0   :  { %v1482_v35 = vpop.eup %1481 }
 0x3b6   :  { %v1286_v24 = vpop.f32.mrb[4].mxu1 }
 0x3b7   :  { %v886_v26 = vsub.f32 %v1286_v24, %v1862_v50  ;;  %v866_v27 = vpop.f32.mrb[5].mxu1 }
 0x3b8   :  { %v885_v29 = vsub.f32 %v866_v27, %v1864_v54 }
 0x3b9   :  { %v892_v0 = vmul.f32 2.0, %v886_v26 }
 0x3ba   :  { %v891_v4 = vmul.f32 2.0, %v885_v29 }
 0x3bb   :  { %v894_v1 = vadd.f32 0.0009, %v892_v0 }
 0x3bc   :  { %v893_v31 = vadd.f32 0.0009, %v891_v4 }
 0x3bd   :  { %v896_v32 = vmul.f32 %v894_v1, %v890_v30 }
 0x3be   :  { %v895_v34 = vmul.f32 %v893_v31, %v889_v5 }
 0x3bf   :  { %v910_v36 = vmul.f32 %v1480_v33, %v896_v32 }
 0x3c0   :  { %v909_v37 = vmul.f32 %v1482_v35, %v895_v34 }
 0x3c2   :  { %v911_v38 = vadd.f32 %v910_v36, %v909_v37 }
 0x3c4   :  { %912 = vadd.xlane.f32.xlu0 %v911_v38 }
 0x3c5   :  { %1582 = shalt.err (!%p1579_p8)
}
 0x3c6   :  { %s1583_s20 = scalar_lea.hbm %s1923_s4, 16 }
 0x3c7   :  { %p1584_p9 = scmp.ne.s32.totalorder %s1923_s4, %s1583_s20  ;;  %p1587_p10 = scmp.lt.u32.totalorder %s1583_s20, %s1923_s4 }
 0x3c9   :  { %p1589_p11 = pnand %p1587_p10, %p1584_p9 }
 0x3cb   :  { %1592 = shalt.err (!%p1589_p11)
}
 0x3cc   :  { %935 = dma.vmem_to_hbm [thread:$0]  %s933_s6, 16, %s1923_s4, [#allocation4]  }
 0x3cd   :  { %s1632_s28 = smov [#allocation11]  }
 0x3ce   :  { %s942_s29 = sshll.u32 %s1632_s28, 4  ;;  %s943_s29 = int_to_ptr.vmem [resolvable:$true] %s942_s29 }
 0x3cf   :  { %s1593_s21 = scalar_lea.vmem %s943_s29, 16  ;;  %s1597_s7 = scalar_lea.vmem %s943_s29, 32 }
 0x3d0   :  { %p1594_p12 = scmp.ne.s32.totalorder %s943_s29, %s1593_s21  ;;  %p1598_p13 = scmp.lt.s32.totalorder %s943_s29, %s943_s29 }
 0x3d1   :  { %p1599_p0 = scmp.lt.s32.totalorder %s1597_s7, %s1593_s21 }
 0x3d3   :  { %p1600_p1 = por %p1599_p0, %p1598_p13 }
 0x3d5   :  { %p1601_p2 = pnand %p1600_p1, %p1594_p12 }
 0x451   :  { %v913_v47 = vpop.xlane.xlu0 %912 }
 0x452   :  { %v914_v48 = vrot.slane %v913_v47, 4 }
 0x454   :  { %v915_v49 = vadd.f32 %v914_v48, %v913_v47 }
 0x456   :  { %v916_v50 = vrot.slane %v915_v49, 2 }
 0x458   :  { %v917_v51 = vadd.f32 %v916_v50, %v915_v49 }
 0x45a   :  { %v918_v52 = vrot.slane %v917_v51, 1 }
 0x45c   :  { %v919_v53 = vadd.f32 %v918_v52, %v917_v51 }
 0x45e   :  { %1469 = vpush %v919_v53 }
 0x48f   :  { %s1470_s0 = spop %1469 }
 0x490   :  { %v924_v54 = vstv %s1470_s0 }
 0x491   :  { %925 = vst.msk [vmem:[#allocation11] sm:$0x1] %vm922_vm1, %v924_v54 }
 0x492   :  { %1604 = shalt.err (!%p1601_p2)
}
 0x493   :  { %s1605_s9 = scalar_lea.hbm %s1924_s5, 16 }
 0x494   :  { %p1606_p3 = scmp.ne.s32.totalorder %s1924_s5, %s1605_s9  ;;  %p1609_p4 = scmp.lt.u32.totalorder %s1605_s9, %s1924_s5 }
 0x496   :  { %p1611_p5 = pnand %p1609_p4, %p1606_p3 }
 0x498   :  { %1614 = shalt.err (!%p1611_p5)
}
 0x499   :  { %945 = dma.vmem_to_hbm [thread:$0]  %s943_s29, 16, %s1924_s5, [#allocation12]  }
 0x49a   :  { %1621 = dma.done.wait [#allocation4], 16  }
 0x49b   :  { %1622 = vsyncadd [#allocation4], 4294967280 }
 0x49c   :  { %1623 = dma.done.wait [#allocation12], 16  }
 0x49d   :  { %1624 = vsyncadd [#allocation12], 4294967280 }
 0x49e   :  { %952 = vsyncpa [#allocation3], 1 }
 0x49f   :  { %953 = vsyncpa [#allocation6], 1 }
 0x4a0   :  { %954 = vsyncpa [#allocation9], 1 }
 0x4a1   :  { %955 = vsyncpa [#allocation4], 1 }
 0x4a2   :  { %956 = vsyncpa [#allocation12], 1 }

</bundles_post_ra>
